<compile_context>
chip_gen: v7x
topology: tpu7x:2x2x1
jax: 0.10.0
libtpu: 0.0.40
codegen_flags: <defaults>
</compile_context>

<pallas_src>
import functools

import jax
import jax.numpy as jnp
from jax import lax
from jax.experimental import pallas as pl
from jax.experimental.pallas import tpu as pltpu


# ---------------------------------------------------------------------------
# Kernel A: per-node projection  h = ReLU(x) @ W,  alpha = h @ [a_src | a_dst]
# ---------------------------------------------------------------------------
def gat_project_kernel(x_ref, w_ref, att_ref, h_ref, alpha_ref):
    """x_ref [T, F_in], w_ref [F_in, H*F], att_ref [H*F, 2H] ->
       h_ref [T, H*F], alpha_ref [T, 2H]."""
    # ReLU is the module's self.activation, applied to each GATConv's input.
    h = jnp.dot(jnp.maximum(x_ref[...], 0.0), w_ref[...],
                preferred_element_type=jnp.float32)
    h_ref[...] = h
    # Fused attention-vector matmuls: one wide dot instead of 12 one-lane dots.
    alpha_ref[...] = jnp.dot(h, att_ref[...],
                             preferred_element_type=jnp.float32)


# ---------------------------------------------------------------------------
# Kernel B: masked attention softmax + aggregation for one query-node tile
# ---------------------------------------------------------------------------
def gat_attend_kernel(h_ref, asrc_ref, adst_ref, adj_ref, bias_ref, o_ref,
                      *, heads, f_out, negative_slope, clamp_out):
    """
    h_ref    : [N, heads*F_out]   projected features of ALL source nodes
    asrc_ref : [N, 2*heads]       alpha of all nodes   (cols [0, heads) = src term)
    adst_ref : [T, 2*heads]       alpha of query tile  (cols [heads, 2*heads) = dst term)
    adj_ref  : [T, N]  (bf16)     adj[i, j] = 1 iff edge j -> i (incl. self loop)
    bias_ref : [1, F_out]
    o_ref    : [T, F_out]
    """
    n = h_ref.shape[0]
    t = adj_ref.shape[0]
    mask = adj_ref[...] > 0                                      # [T, N]
    ones_n = jnp.ones((n, 1), jnp.float32)
    ones_t = jnp.ones((t, 1), jnp.float32)
    neg = jnp.float32(-1e30)

    acc = jnp.zeros((t, f_out), jnp.float32)
    for hd in range(heads):                                      # heads=6, unrolled
        hh = h_ref[:, hd * f_out:(hd + 1) * f_out]               # [N, F_out]
        a_s = asrc_ref[:, hd:hd + 1]                             # [N, 1]
        a_d = adst_ref[:, heads + hd:heads + hd + 1]             # [T, 1]
        # e[i, j] = a_dst[i] + a_src[j] as one K=2 MXU op (no [T, N] VPU add).
        lhs = jnp.concatenate([ones_t, a_d], axis=1)             # [T, 2]
        rhs = jnp.concatenate([a_s, ones_n], axis=1)             # [N, 2]
        e = lax.dot_general(lhs, rhs, (((1,), (1,)), ((), ())),
                            preferred_element_type=jnp.float32)  # [T, N]
        # Fused LeakyReLU(0.2) + adjacency mask in one select chain.
        e = jnp.where(mask, jnp.maximum(e, negative_slope * e), neg)
        e_max = jnp.max(e, axis=1, keepdims=True)                # [T, 1]
        p = jnp.exp(e - e_max)                  # masked entries underflow to 0.0
        l = jnp.sum(p, axis=1, keepdims=True)   # >= 1 thanks to guaranteed self loop
        # Aggregate with UNNORMALIZED weights; normalize the [T, F_out] result
        # instead of dividing the whole [T, N] attention matrix.
        out_h = jnp.dot(p, hh, preferred_element_type=jnp.float32)
        acc = acc + out_h * pl.reciprocal(l)    # exact; only T values per head
    out = acc * jnp.float32(1.0 / heads) + bias_ref[...]         # concat=False -> mean + bias
    if clamp_out:
        out = jnp.maximum(out, 0.0)                              # torch.clamp(x, min=0)
    o_ref[...] = out.astype(o_ref.dtype)


# ---------------------------------------------------------------------------
# One GATConv layer = projection pallas_call + attention pallas_call
# ---------------------------------------------------------------------------
def gat_conv(x, adj, w, att, bias, *, heads, f_out, tile_n, clamp_out=False):
    n_pad, f_in = x.shape
    hf = heads * f_out
    assert n_pad % tile_n == 0 and adj.shape == (n_pad, n_pad)

    # --- Kernel A: projection + attention coefficients, computed once ---
    h, alpha = pl.pallas_call(
        gat_project_kernel,
        out_shape=(jax.ShapeDtypeStruct((n_pad, hf), jnp.float32),
                   jax.ShapeDtypeStruct((n_pad, 2 * heads), jnp.float32)),
        grid_spec=pltpu.PrefetchScalarGridSpec(
            num_scalar_prefetch=0,
            grid=(n_pad // tile_n,),
            in_specs=[
                pl.BlockSpec((tile_n, f_in), lambda i: (i, 0)),       # x tile
                pl.BlockSpec((f_in, hf), lambda i: (0, 0)),           # W
                pl.BlockSpec((hf, 2 * heads), lambda i: (0, 0)),      # [a_src|a_dst]
            ],
            out_specs=[
                pl.BlockSpec((tile_n, hf), lambda i: (i, 0)),         # h
                pl.BlockSpec((tile_n, 2 * heads), lambda i: (i, 0)),  # alpha
            ],
        ),
        compiler_params=pltpu.CompilerParams(
            dimension_semantics=("parallel",)),
    )(x, w, att)

    # --- Kernel B: masked softmax attention + aggregation over query tiles ---
    kernel = functools.partial(gat_attend_kernel, heads=heads, f_out=f_out,
                               negative_slope=0.2, clamp_out=clamp_out)
    return pl.pallas_call(
        kernel,
        out_shape=jax.ShapeDtypeStruct((n_pad, f_out), jnp.float32),
        grid_spec=pltpu.PrefetchScalarGridSpec(
            num_scalar_prefetch=0,
            grid=(n_pad // tile_n,),
            in_specs=[
                pl.BlockSpec((n_pad, hf), lambda i: (0, 0)),          # h (all sources)
                pl.BlockSpec((n_pad, 2 * heads), lambda i: (0, 0)),   # alpha (all, src cols)
                pl.BlockSpec((tile_n, 2 * heads), lambda i: (i, 0)),  # alpha (query tile, dst cols)
                pl.BlockSpec((tile_n, n_pad), lambda i: (i, 0)),      # adj rows (bf16)
                pl.BlockSpec((1, f_out), lambda i: (0, 0)),           # bias
            ],
            out_specs=pl.BlockSpec((tile_n, f_out), lambda i: (i, 0)),
        ),
        compiler_params=pltpu.CompilerParams(
            dimension_semantics=("parallel",),
            vmem_limit_bytes=48 * 1024 * 1024,
        ),
    )(h, alpha, alpha, adj, bias)


def _round_up(v, m):
    return ((v + m - 1) // m) * m


def build_attention_matrix(att_src, att_dst, heads, f_out):
    """att_src/att_dst [f_out, heads] -> block matrix [heads*f_out, 2*heads]."""
    a = jnp.zeros((heads * f_out, 2 * heads), jnp.float32)
    for h in range(heads):
        a = a.at[h * f_out:(h + 1) * f_out, h].set(att_src[:, h])
        a = a.at[h * f_out:(h + 1) * f_out, heads + h].set(att_dst[:, h])
    return a


def output_layer_gat_forward(x, edge_index, params, *, binary, max_tile_n=512):
    n = x.shape[0]
    heads = params["heads"]
    end_channels = params["end_channels"]
    out_channels = params["out_channels"]

    tile_n = min(max_tile_n, _round_up(n, 8))
    n_pad = _round_up(n, tile_n)

    x_flat = x.reshape(n, -1).astype(jnp.float32)        # x.view(x.shape[0], -1)
    if n_pad > n:
        x_flat = jnp.pad(x_flat, ((0, n_pad - n), (0, 0)))

    # Dense adjacency with self loops (GATConv add_self_loops=True), stored as
    # bf16 (0/1 exactly representable) to halve the dominant O(N^2) HBM traffic.
    # Padded rows have no edges/self loops: their finite outputs are sliced off
    # at the end and, as sources, are always masked out of real rows.
    adj = jnp.zeros((n_pad, n_pad), jnp.float32)
    adj = adj.at[edge_index[1], edge_index[0]].set(1.0)
    adj = adj.at[jnp.arange(n), jnp.arange(n)].set(1.0)
    adj = adj.astype(jnp.bfloat16)

    att1 = build_attention_matrix(params["att_src1"], params["att_dst1"],
                                  heads, end_channels)
    att2 = build_attention_matrix(params["att_src2"], params["att_dst2"],
                                  heads, out_channels)

    # fc: GATConv(in_channels, end_channels, heads=6, concat=False, bias=True)
    h1 = gat_conv(x_flat, adj, params["W1"], att1, params["b1"],
                  heads=heads, f_out=end_channels, tile_n=tile_n)
    # TODO(synk): Dropout(0.3) omitted — eval-mode (inference) identity.
    # fc2: GATConv(end_channels, out_channels, heads=6, concat=False) + clamp
    h2 = gat_conv(h1, adj, params["W2"], att2, params["b2"],
                  heads=heads, f_out=out_channels, tile_n=tile_n,
                  clamp_out=True)
    h2 = h2[:n]
    if binary:
        h2 = jax.nn.softmax(h2, axis=1)                  # nn.Softmax() on 2D -> dim=1
    return h2


def make_params(key, in_channels, end_channels, out_channels, heads):
    def glorot(k, shape):
        fan_in, fan_out = shape[0], shape[-1]
        lim = (6.0 / (fan_in + fan_out)) ** 0.5
        return jax.random.uniform(k, shape, jnp.float32, -lim, lim)

    ks = jax.random.split(key, 6)
    return {
        "heads": heads,
        "end_channels": end_channels,
        "out_channels": out_channels,
        "W1": glorot(ks[0], (in_channels, heads * end_channels)),
        "att_src1": glorot(ks[1], (end_channels, heads)),
        "att_dst1": glorot(ks[2], (end_channels, heads)),
        "b1": jnp.zeros((1, end_channels), jnp.float32),
        "W2": glorot(ks[3], (end_channels, heads * out_channels)),
        "att_src2": glorot(ks[4], (out_channels, heads)),
        "att_dst2": glorot(ks[5], (out_channels, heads)),
        "b2": jnp.zeros((1, out_channels), jnp.float32),
    }


if __name__ == "__main__":
    key = jax.random.PRNGKey(0)
    k_x, k_p = jax.random.split(key)

    # Small shapes: 8 graph nodes, node feature [C=4, T=8] -> in_channels=32.
    N, C, T = 8, 4, 8
    in_channels = C * T
    end_channels = 16
    heads = 6
    binary = True
    out_channels = 2 if binary else 1

    x = jax.random.normal(k_x, (N, C, T), jnp.float32)

    # Bidirectional ring graph: 16 directed edges, [2, E] (src row 0, dst row 1).
    src = jnp.arange(N, dtype=jnp.int32)
    dst = (src + 1) % N
    edge_index = jnp.stack([jnp.concatenate([src, dst]),
                            jnp.concatenate([dst, src])])

    params = make_params(k_p, in_channels, end_channels, out_channels, heads)

    out = output_layer_gat_forward(x, edge_index, params, binary=binary)
    out = jax.block_until_ready(out)
    assert out.shape == (N, out_channels)
    assert bool(jnp.all(jnp.isfinite(out)))
    print("KERNEL_OK")
</pallas_src>

<mosaic_0001>
module attributes {stable_mosaic.version = 11 : i64} {
  func.func @gat_project_kernel(%arg0: i32, %arg1: memref<8x32xf32, #tpu.memory_space<vmem>>, %arg2: memref<32x96xf32, #tpu.memory_space<vmem>>, %arg3: memref<96x12xf32, #tpu.memory_space<vmem>>, %arg4: memref<8x96xf32, #tpu.memory_space<vmem>>, %arg5: memref<8x12xf32, #tpu.memory_space<vmem>>) attributes {dimension_semantics = [#tpu.dimension_semantics<parallel>], iteration_bounds = array<i64: 1>, scalar_prefetch = 0 : i64, scratch_operands = 0 : i64, tpu.core_type = #tpu.core_type<tc>, window_params = [{transform_indices = @transform_0, window_bounds = array<i64: 8, 32>}, {pipeline_mode = #tpu.pipeline_mode<synchronous>, transform_indices = @transform_1, window_bounds = array<i64: 32, 96>}, {pipeline_mode = #tpu.pipeline_mode<synchronous>, transform_indices = @transform_2, window_bounds = array<i64: 96, 12>}, {transform_indices = @transform_3, window_bounds = array<i64: 8, 96>}, {transform_indices = @transform_4, window_bounds = array<i64: 8, 12>}]} {
    %c0 = arith.constant 0 : index
    %c0_0 = arith.constant 0 : index
    %0 = vector.load %arg1[%c0, %c0_0] : memref<8x32xf32, #tpu.memory_space<vmem>>, vector<8x32xf32>
    %cst = arith.constant 0.000000e+00 : f32
    %1 = vector.broadcast %cst : f32 to vector<8x32xf32>
    %2 = arith.maximumf %0, %1 : vector<8x32xf32>
    %c0_1 = arith.constant 0 : index
    %c0_2 = arith.constant 0 : index
    %3 = vector.load %arg2[%c0_1, %c0_2] : memref<32x96xf32, #tpu.memory_space<vmem>>, vector<32x96xf32>
    %cst_3 = arith.constant dense<0.000000e+00> : vector<8x96xf32>
    %4 = tpu.matmul %2, %3, %cst_3 {dimension_numbers = #tpu.dot_dimension_numbers<[1], [0], [0], [1], [0, 0, 1, 1], [], []>} : vector<8x32xf32>, vector<32x96xf32>, vector<8x96xf32> -> vector<8x96xf32>
    %c0_4 = arith.constant 0 : index
    %c0_5 = arith.constant 0 : index
    %5 = vector.load %arg4[%c0_4, %c0_5] : memref<8x96xf32, #tpu.memory_space<vmem>>, vector<8x96xf32>
    tpu.vector_store %arg4[%c0_4, %c0_5], %4 {strides = array<i32>} : memref<8x96xf32, #tpu.memory_space<vmem>>, vector<8x96xf32>,
    %c0_6 = arith.constant 0 : index
    %c0_7 = arith.constant 0 : index
    %6 = vector.load %arg3[%c0_6, %c0_7] : memref<96x12xf32, #tpu.memory_space<vmem>>, vector<96x12xf32>
    %cst_8 = arith.constant dense<0.000000e+00> : vector<8x12xf32>
    %7 = tpu.matmul %4, %6, %cst_8 {dimension_numbers = #tpu.dot_dimension_numbers<[1], [0], [0], [1], [0, 0, 1, 1], [], []>} : vector<8x96xf32>, vector<96x12xf32>, vector<8x12xf32> -> vector<8x12xf32>
    %c0_9 = arith.constant 0 : index
    %c0_10 = arith.constant 0 : index
    %8 = vector.load %arg5[%c0_9, %c0_10] : memref<8x12xf32, #tpu.memory_space<vmem>>, vector<8x12xf32>
    tpu.vector_store %arg5[%c0_9, %c0_10], %7 {strides = array<i32>} : memref<8x12xf32, #tpu.memory_space<vmem>>, vector<8x12xf32>,
    return
  }
  func.func @transform_0(%arg0: i32) -> (i32, i32) {
    %c0_i32 = arith.constant 0 : i32
    %c0_i32_0 = arith.constant 0 : i32
    return %arg0, %c0_i32 : i32, i32
  }
  func.func @transform_1(%arg0: i32) -> (i32, i32) {
    %c0_i32 = arith.constant 0 : i32
    %c0_i32_0 = arith.constant 0 : i32
    %c0_i32_1 = arith.constant 0 : i32
    return %c0_i32, %c0_i32_0 : i32, i32
  }
  func.func @transform_2(%arg0: i32) -> (i32, i32) {
    %c0_i32 = arith.constant 0 : i32
    %c0_i32_0 = arith.constant 0 : i32
    %c0_i32_1 = arith.constant 0 : i32
    return %c0_i32, %c0_i32_0 : i32, i32
  }
  func.func @transform_3(%arg0: i32) -> (i32, i32) {
    %c0_i32 = arith.constant 0 : i32
    %c0_i32_0 = arith.constant 0 : i32
    return %arg0, %c0_i32 : i32, i32
  }
  func.func @transform_4(%arg0: i32) -> (i32, i32) {
    %c0_i32 = arith.constant 0 : i32
    %c0_i32_0 = arith.constant 0 : i32
    return %arg0, %c0_i32 : i32, i32
  }
}

</mosaic_0001>

<bundles_post_ra>
// kernel: tpu_custom_call.1
= control target key start
LH: loop header
LB: loop body
LE: loop exit
PB: predicated region body
PF: predicated region fallthrough
CT: control target
= control target key end

     0   :  { %10 = vsyncpa [#allocation3], 0  ;;  %v350_v3 = vmov 0.0|0.0   ;;  %vm351_vm0 = vmmov 0   ;;  %v352_v6 = vmov 0.0   ;;  %s455_s0 = inlined_call_operand.vmem [shape: f32[8,32], index: 0, kind: input, shape index: {}]   ;;  %s456_s1 = inlined_call_operand.vmem [shape: f32[32,96], index: 1, kind: input, shape index: {}]   ;;  %s457_s2 = inlined_call_operand.vmem [shape: f32[96,12], index: 2, kind: input, shape index: {}]   ;;  %s458_s3 = inlined_call_operand.hbm [shape: f32[8,96], index: 3, kind: output, shape index: {0}]   ;;  %s459_s4 = inlined_call_operand.hbm [shape: f32[8,12], index: 4, kind: output, shape index: {1}]  }
   0x1   :  { %v20_v0 = vld [vmem:[%s456_s1] sm:$0xff]  ;;  %v21_v1 = vld [vmem:[%s456_s1 + $0x8] sm:$0xff]  ;;  %v22_v2 = vld [vmem:[%s456_s1 + $0x10] sm:$0xff]  ;;  %273 = vmatprep.subr.bf16.mxu0 %v350_v3  ;;  %243 = vmatprep.mubr.msk.f32.mxu0 %vm351_vm0, %v352_v6 }
   0x2   :  { %v274_v4 = vpack.c.bf16 %v21_v1, %v20_v0  ;;  %v23_v5 = vld [vmem:[%s456_s1 + $0x18] sm:$0xff]  ;;  %v100_v7 = vld [vmem:[%s457_s2] sm:$0xff]  ;;  %279 = vmatprep.subr.bf16.mxu1 %v350_v3  ;;  %v101_v8 = vld [vmem:[%s457_s2 + $0x8] sm:$0xff]  ;;  %270 = vmatprep.mubr.msk.f32.mxu1 %vm351_vm0, %v352_v6 }
   0x3   :  { %v102_v9 = vld [vmem:[%s457_s2 + $0x10] sm:$0xff]  ;;  %v103_v10 = vld [vmem:[%s457_s2 + $0x18] sm:$0xff]  ;;  %v277_v11 = vpack.c.bf16 %v23_v5, %v22_v2  ;;  %v18_v12 = vld [vmem:[%s455_s0] sm:$0xff]  ;;  %v280_v13 = vpack.c.bf16 %v101_v8, %v100_v7 }
   0x4   :  { %275 = vmatpush3.bf16.msra.mxu0 %v274_v4  ;;  %v283_v14 = vpack.c.bf16 %v103_v10, %v102_v9 }
   0x5   :  { %276 = vmatprep.subr.bf16.mxu0 %v350_v3  ;;  %281 = vmatpush3.bf16.msra.mxu1 %v280_v13 }
   0x6   :  { %11 = vsyncpa [#allocation5], 0  ;;  %v19_v15 = vmax.f32 %v18_v12, 0.0  ;;  %282 = vmatprep.subr.bf16.mxu1 %v350_v3  ;;  %v104_v16 = vld [vmem:[%s457_s2 + $0x20] sm:$0xff]  ;;  %v105_v17 = vld [vmem:[%s457_s2 + $0x28] sm:$0xff]  ;;  %vm24_vm1 = vcmask 261120  }
   0x7   :  { %v286_v18 = vpack.c.bf16 %v105_v17, %v104_v16  ;;  %v106_v19 = vld [vmem:[%s457_s2 + $0x30] sm:$0xff]  ;;  %v107_v20 = vld [vmem:[%s457_s2 + $0x38] sm:$0xff]  ;;  %v108_v22 = vld [vmem:[%s457_s2 + $0x40] sm:$0xff]  ;;  %vm98_vm2 = vcmask 785408   ;;  %s353_s21 = smov [#allocation2]  }
   0x8   :  { %278 = vmatpush3.bf16.msra.mxu0 %v277_v11  ;;  %v289_v21 = vpack.c.bf16 %v107_v20, %v106_v19  ;;  %v109_v23 = vld [vmem:[%s457_s2 + $0x48] sm:$0xff]  ;;  %v110_v25 = vld [vmem:[%s457_s2 + $0x50] sm:$0xff]  ;;  %v111_v26 = vld [vmem:[%s457_s2 + $0x58] sm:$0xff]  ;;  %s193_s22 = sshll.u32 %s353_s21, 4  ;;  %s194_s22 = int_to_ptr.vmem [resolvable:$true] %s193_s22 }
   0x9   :  { %284 = vmatpush3.bf16.msra.mxu1 %v283_v14  ;;  %v292_v24 = vpack.c.bf16 %v109_v23, %v108_v22  ;;  %v295_v27 = vpack.c.bf16 %v111_v26, %v110_v25  ;;  %s302_s23 = scalar_lea.vmem %s194_s22, 128  ;;  %p307_p1 = scmp.lt.s32.totalorder %s194_s22, %s194_s22 }
   0xa   :  { %285 = vmatprep.subr.bf16.mxu1 %v350_v3  ;;  %p303_p0 = scmp.ne.s32.totalorder %s194_s22, %s302_s23  ;;  %p308_p2 = scmp.lt.s32.totalorder %s302_s23, %s302_s23 }
   0xb   :  { %244 = vmatmul.mubr.msk.f32.vlgmr.msra.gmra.mrb[0].mxu0 %vm24_vm1, %v19_v15 }
   0xc   :  { %p309_p3 = por %p308_p2, %p307_p1 }
   0xd   :  { %287 = vmatpush3.bf16.msra.mxu1 %v286_v18 }
   0xe   :  { %288 = vmatprep.subr.bf16.mxu1 %v350_v3  ;;  %p310_p4 = pnand %p309_p3, %p303_p0 }
  0x11   :  { %290 = vmatpush3.bf16.msra.mxu1 %v289_v21 }
  0x12   :  { %291 = vmatprep.subr.bf16.mxu1 %v350_v3 }
  0x15   :  { %293 = vmatpush3.bf16.msra.mxu1 %v292_v24 }
  0x16   :  { %294 = vmatprep.subr.bf16.mxu1 %v350_v3 }
  0x19   :  { %296 = vmatpush3.bf16.msra.mxu1 %v295_v27 }
  0xde   :  { %v94_v28 = vpop.f32.mrb[0].mxu0 }
  0xdf   :  { %v245_v29 = vpop.f32.mrb[1].mxu0  ;;  %271 = vmatmul.mubr.msk.f32.vlgmr.msra.gmra.mrb[0].mxu1 %vm98_vm2, %v94_v28  ;;  %99 = vst.msk [vmem:[#allocation2] sm:$0xff] %vm98_vm2, %v94_v28 }
  0xe0   :  { %313 = shalt.err (!%p310_p4)
}
  0xe1   :  { %s314_s25 = scalar_lea.hbm %s458_s3, 128 }
  0xe2   :  { %p315_p5 = scmp.ne.s32.totalorder %s458_s3, %s314_s25  ;;  %p318_p6 = scmp.lt.u32.totalorder %s314_s25, %s458_s3 }
  0xe4   :  { %p320_p7 = pnand %p318_p6, %p315_p5 }
  0xe6   :  { %323 = shalt.err (!%p320_p7)
}
  0xe7   :  { %196 = dma.vmem_to_hbm [thread:$0]  %s194_s22, 128, %s458_s3, [#allocation3]   ;;  %vm185_vm3 = vcmask 97280  }
  0xe8   :  { %s354_s5 = smov [#allocation4]  }
  0xe9   :  { %s203_s6 = sshll.u32 %s354_s5, 4  ;;  %s204_s6 = int_to_ptr.vmem [resolvable:$true] %s203_s6 }
  0xea   :  { %s324_s7 = scalar_lea.vmem %s204_s6, 128  ;;  %p329_p9 = scmp.lt.s32.totalorder %s204_s6, %s204_s6 }
  0xeb   :  { %p325_p8 = scmp.ne.s32.totalorder %s204_s6, %s324_s7  ;;  %p330_p10 = scmp.lt.s32.totalorder %s324_s7, %s324_s7 }
  0xed   :  { %p331_p11 = por %p330_p10, %p329_p9 }
  0xef   :  { %p332_p12 = pnand %p331_p11, %p325_p8 }
 0x1b2   :  { %v181_v30 = vpop.f32.mrb[0].mxu1 }
 0x1b3   :  { %186 = vst.msk [vmem:[#allocation4] sm:$0xff] %vm185_vm3, %v181_v30  ;;  %v272_v31 = vpop.f32.mrb[1].mxu1 }
 0x1b4   :  { %335 = shalt.err (!%p332_p12)
}
 0x1b5   :  { %s336_s0 = scalar_lea.hbm %s459_s4, 128 }
 0x1b6   :  { %p337_p13 = scmp.ne.s32.totalorder %s459_s4, %s336_s0  ;;  %p340_p0 = scmp.lt.u32.totalorder %s336_s0, %s459_s4 }
 0x1b8   :  { %p342_p1 = pnand %p340_p0, %p337_p13 }
 0x1ba   :  { %345 = shalt.err (!%p342_p1)
}
 0x1bb   :  { %206 = dma.vmem_to_hbm [thread:$0]  %s204_s6, 128, %s459_s4, [#allocation5]  }
 0x1bc   :  { %346 = dma.done.wait [#allocation3], 128  }
 0x1bd   :  { %347 = vsyncadd [#allocation3], 4294967168 }
 0x1be   :  { %348 = dma.done.wait [#allocation5], 128  }
 0x1bf   :  { %349 = vsyncadd [#allocation5], 4294967168 }
 0x1c0   :  { %213 = vsyncpa [#allocation3], 1 }
 0x1c1   :  { %214 = vsyncpa [#allocation5], 1 }

</bundles_post_ra>
